<compile_context>
chip_gen: v5e
topology: v5e:2x2
jax: 0.10.0
libtpu: 0.0.40
codegen_flags: <defaults>
</compile_context>

<pallas_src>
import jax
import jax.numpy as jnp
from jax.experimental import pallas as pl
from jax.experimental.pallas import tpu as pltpu

_SUBLANE = 8                                  # f32 sublanes per vreg
_LANE = 128                                   # lanes per vreg
_NEG_LARGE = float(jnp.finfo(jnp.float32).min)  # pad value: exp() underflows to 0


def _row_softmax_kernel(x_ref, o_ref):
    """Numerically-stable row-wise softmax of one VMEM-resident f32 tile."""
    x = x_ref[...]                                    # (Bp, Np) f32, already lane-dense
    m = jnp.max(x, axis=-1, keepdims=True)            # row max       (XLU)
    e = jnp.exp(x - m)                                # shifted exp   (EUP)
    denom = jnp.sum(e, axis=-1, keepdims=True)        # row sum       (XLU)
    # approx reciprocal runs on the otherwise-idle EUP slot (rel err ~1e-3,
    # fine for policy probabilities).
    o_ref[...] = e * pl.reciprocal(denom, approx=True)


def _row_softmax(x2d: jax.Array) -> jax.Array:
    """Row-wise softmax of a (B, N) array via one grid-free pallas_call."""
    b, n = x2d.shape
    bp = ((b + _SUBLANE - 1) // _SUBLANE) * _SUBLANE
    np_ = ((n + _LANE - 1) // _LANE) * _LANE
    # Pad with a huge negative value: padded lanes contribute exp()==0 to the
    # real rows' denominators; fully-padded rows become a uniform distribution
    # (no NaNs) and are sliced away below.
    xp = jnp.full((bp, np_), _NEG_LARGE, dtype=jnp.float32)
    xp = xp.at[:b, :n].set(x2d.astype(jnp.float32))

    probs = pl.pallas_call(
        _row_softmax_kernel,
        out_shape=jax.ShapeDtypeStruct((bp, np_), jnp.float32),
        in_specs=[pl.BlockSpec(memory_space=pltpu.MemorySpace.VMEM)],
        out_specs=pl.BlockSpec(memory_space=pltpu.MemorySpace.VMEM),
    )(xp)
    return probs[:b, :n]


def policy_forward(logits: jax.Array) -> jax.Array:
    """Equivalent of Policy.forward(): softmax over the (num_actions,) logits."""
    return _row_softmax(logits[None, :])[0]


def policy_forward_batched(logits_batch: jax.Array) -> jax.Array:
    """Row-wise softmax for a (B, num_actions) batch of logits in one launch."""
    return _row_softmax(logits_batch)


if __name__ == "__main__":
    num_actions = 8
    key = jax.random.PRNGKey(0)

    # Canonical parameter init (nn.Parameter(torch.zeros(num_actions))) plus a
    # deterministic non-trivial variant.
    logits_zero = jnp.zeros((num_actions,), dtype=jnp.float32)
    logits_rand = jax.random.normal(key, (num_actions,), dtype=jnp.float32)

    for logits in (logits_zero, logits_rand):
        probs = jax.block_until_ready(policy_forward(logits))
        ref = jax.nn.softmax(logits, axis=-1)
        assert probs.shape == (num_actions,)
        assert jnp.allclose(probs, ref, atol=5e-3), (probs, ref)
        assert jnp.allclose(jnp.sum(probs), 1.0, atol=5e-3)

    # Batched path: many rows amortize the single kernel launch.
    batch = 4
    logits_batch = jax.random.normal(
        jax.random.PRNGKey(0), (batch, num_actions), dtype=jnp.float32)
    probs_b = jax.block_until_ready(policy_forward_batched(logits_batch))
    ref_b = jax.nn.softmax(logits_batch, axis=-1)
    assert probs_b.shape == (batch, num_actions)
    assert jnp.allclose(probs_b, ref_b, atol=5e-3), (probs_b, ref_b)

    print("KERNEL_OK")
</pallas_src>

<mosaic_0001>
module attributes {stable_mosaic.version = 11 : i64} {
  func.func @_row_softmax_kernel(%arg0: memref<8x128xf32, #tpu.memory_space<vmem>>, %arg1: memref<8x128xf32, #tpu.memory_space<vmem>>) attributes {dimension_semantics = [], scalar_prefetch = 0 : i64, scratch_operands = 0 : i64, tpu.core_type = #tpu.core_type<tc>} {
    %c0 = arith.constant 0 : index
    %c0_0 = arith.constant 0 : index
    %0 = vector.load %arg0[%c0, %c0_0] : memref<8x128xf32, #tpu.memory_space<vmem>>, vector<8x128xf32>
    %cst = arith.constant dense<0xFF800000> : vector<8xf32>
    %1 = vector.multi_reduction <maximumf>, %0, %cst [1] : vector<8x128xf32> to vector<8xf32>
    %2 = vector.shape_cast %1 : vector<8xf32> to vector<8x1xf32>
    %3 = vector.broadcast %2 : vector<8x1xf32> to vector<8x128xf32>
    %4 = arith.subf %0, %3 : vector<8x128xf32>
    %5 = math.exp %4 : vector<8x128xf32>
    %cst_1 = arith.constant dense<0.000000e+00> : vector<8xf32>
    %6 = vector.multi_reduction <add>, %5, %cst_1 [1] : vector<8x128xf32> to vector<8xf32>
    %7 = vector.shape_cast %6 : vector<8xf32> to vector<8x1xf32>
    %8 = tpu.reciprocal %7 {approx = true} : vector<8x1xf32> -> vector<8x1xf32>
    %9 = vector.broadcast %8 : vector<8x1xf32> to vector<8x128xf32>
    %10 = arith.mulf %5, %9 : vector<8x128xf32>
    %c0_2 = arith.constant 0 : index
    %c0_3 = arith.constant 0 : index
    %11 = vector.load %arg1[%c0_2, %c0_3] : memref<8x128xf32, #tpu.memory_space<vmem>>, vector<8x128xf32>
    tpu.vector_store %arg1[%c0_2, %c0_3], %10 {strides = array<i32>} : memref<8x128xf32, #tpu.memory_space<vmem>>, vector<8x128xf32>,
    return
  }
}

</mosaic_0001>

<bundles_post_ra>
// kernel: tpu_custom_call.1
= control target key start
LH: loop header
LB: loop body
LE: loop exit
PB: predicated region body
PF: predicated region fallthrough
CT: control target
= control target key end

     0   :  { %6 = vsyncpa [#allocation3], 0  ;;  %s127_s0 = inlined_call_operand.hbm [shape: f32[8,128], index: 0, kind: input, shape index: {}]   ;;  %s128_s1 = inlined_call_operand.hbm [shape: f32[8,128], index: 1, kind: output, shape index: {}]  }
   0x1   :  { %7 = vsyncpa [#allocation4], 0  ;;  %s13_s8 = sshll.u32 %s127_s0, 4  ;;  %s109_s9 = smov [#allocation2]   ;;  %s14_s8 = int_to_ptr.hbm [resolvable:$true] %s13_s8 }
   0x2   :  { %s15_s10 = sshll.u32 %s109_s9, 4  ;;  %s16_s10 = int_to_ptr.vmem [resolvable:$true] %s15_s10 }
   0x3   :  { %18 = dma.hbm_to_vmem [thread:$0]  %s14_s8, 128, %s16_s10, [#allocation3]  }
   0x4   :  { %105 = dma.done.wait [#allocation3], 128  }
   0x5   :  { %106 = vsyncadd [#allocation3], 4294967168  ;;  %v23_v0 = vld [vmem:[#allocation2] sm:$0xff]  ;;  %s110_s11 = smov [#allocation5]   ;;  %s41_s14 = sshll.u32 %s128_s1, 4  ;;  %s42_s14 = int_to_ptr.hbm [resolvable:$true] %s41_s14 }
   0x6   :  { %24 = vmax.xlane.f32.xlu0 %v23_v0  ;;  %s39_s12 = sshll.u32 %s110_s11, 4  ;;  %s40_s12 = int_to_ptr.vmem [resolvable:$true] %s39_s12 }
  0x79   :  { %v25_v1 = vpop.xlane.xlu0 %24 }
  0x7a   :  { %v26_v2 = vsub.f32 %v23_v0, %v25_v1 }
  0x7c   :  { %v27_v3 = vmul.f32 1.442695, %v26_v2 }
  0x7e   :  { %53 = vpow2.f32 %v27_v3 }
  0x84   :  { %v54_v4 = vpop.eup %53 }
  0x85   :  { %29 = vadd.xlane.f32.xlu0 %v54_v4 }
  0xf8   :  { %v30_v5 = vpop.xlane.xlu0 %29 }
  0xf9   :  { %55 = vrcp.f32 %v30_v5 }
  0xff   :  { %v56_v6 = vpop.eup %55 }
 0x100   :  { %v32_v7 = vmul.f32 %v56_v6, %v54_v4 }
 0x102   :  { %33 = vst [vmem:[#allocation5] sm:$0xff] %v32_v7 }
 0x103   :  { %44 = dma.vmem_to_hbm [thread:$0]  %s40_s12, 128, %s42_s14, [#allocation4]  }
 0x104   :  { %107 = dma.done.wait [#allocation4], 128  }
 0x105   :  { %108 = vsyncadd [#allocation4], 4294967168 }
 0x106   :  { %49 = vsyncpa [#allocation3], 1 }
 0x107   :  { %50 = vsyncpa [#allocation4], 1 }

</bundles_post_ra>
